<compile_context>
chip_gen: v7x
topology: tpu7x:2x2x1
jax: 0.10.0
libtpu: 0.0.40
codegen_flags: <defaults>
</compile_context>

<pallas_src>
import jax
import jax.numpy as jnp
from jax.experimental import pallas as pl
from jax.experimental.pallas import tpu as pltpu

_LANE = 128  # TPU lane width; only the VMEM-resident hidden dim is padded to this.


def _round_up(x: int, m: int) -> int:
    return (x + m - 1) // m * m


def _mlp_kernel(obs_ref, w0_ref, b0_ref, w1_ref, b1_ref, w2_ref, b2_ref, out_ref):
    """Fused 2-hidden-layer MLP on one batch tile: tanh(tanh(x@W0+b0)@W1+b1)@W2+b2."""
    x = obs_ref[...]

    h = jnp.dot(x, w0_ref[...], preferred_element_type=jnp.float32,
                precision=jax.lax.Precision.HIGHEST) + b0_ref[...]
    h = jnp.tanh(h)

    h = jnp.dot(h, w1_ref[...], preferred_element_type=jnp.float32,
                precision=jax.lax.Precision.HIGHEST) + b1_ref[...]
    h = jnp.tanh(h)

    y = jnp.dot(h, w2_ref[...], preferred_element_type=jnp.float32,
                precision=jax.lax.Precision.HIGHEST) + b2_ref[...]
    out_ref[...] = y.astype(out_ref.dtype)


def prepare_params(params):
    """One-time padding of the hidden dim to lane width (call once, reuse every forward).

    Input params: w0 [ob_dim, size], b0 [1, size], w1 [size, size], b1 [1, size],
                  w2 [size, ac_dim], b2 [1, ac_dim]  (weights are PyTorch weight.T).
    Zero padding of the hidden dim is inert: padded hidden columns are tanh(0)=0 and the
    corresponding padded W1/W2 rows are zero, so results match the unpadded math exactly.
    """
    w0, b0 = params["w0"], params["b0"]
    w1, b1 = params["w1"], params["b1"]
    w2, b2 = params["w2"], params["b2"]
    ob_dim, size = w0.shape
    ac_dim = w2.shape[1]
    hid_p = _round_up(size, _LANE)

    def pad2(a, rows, cols):
        return jnp.zeros((rows, cols), a.dtype).at[: a.shape[0], : a.shape[1]].set(a)

    return {
        "w0": pad2(w0, ob_dim, hid_p), "b0": pad2(b0, 1, hid_p),
        "w1": pad2(w1, hid_p, hid_p), "b1": pad2(b1, 1, hid_p),
        "w2": pad2(w2, hid_p, ac_dim), "b2": b2,
    }


def mlp_policy_forward(obs, prepared, *, block_batch=2048):
    """Run MLPPolicy.forward with a single fused, batch-tiled Pallas kernel.

    obs:      [batch, ob_dim] float32 (streamed unpadded).
    prepared: output of prepare_params() (hidden dim pre-padded to 128, done once).
    """
    w0, b0 = prepared["w0"], prepared["b0"]
    w1, b1 = prepared["w1"], prepared["b1"]
    w2, b2 = prepared["w2"], prepared["b2"]

    batch, ob_dim = obs.shape
    hid_p = w0.shape[1]
    ac_dim = w2.shape[1]

    # Batch tile: large (per-step overhead dominates at these tiny feature widths), but
    # capped at ceil(batch/2) so big batches keep >= 2 grid steps for megacore sharding.
    tb = _round_up(min(block_batch, max(pl.cdiv(batch, 2), 8)), 8)
    grid = (pl.cdiv(batch, tb),)

    def tiled(shape):      # obs / out: block index advances with the batch grid axis
        return pl.BlockSpec(shape, lambda i: (i, 0))

    def resident(shape):   # weights / biases: same block every step -> stay in VMEM
        return pl.BlockSpec(shape, lambda i: (0, 0))

    in_specs = [
        tiled((tb, ob_dim)),               # obs streamed at true width (16)
        resident((ob_dim, hid_p)), resident((1, hid_p)),
        resident((hid_p, hid_p)), resident((1, hid_p)),
        resident((hid_p, ac_dim)), resident((1, ac_dim)),
    ]
    out_spec = tiled((tb, ac_dim))         # output written at true width (4)

    cost = pl.CostEstimate(
        flops=2 * batch * (ob_dim * hid_p + hid_p * hid_p + hid_p * ac_dim),
        transcendentals=2 * batch * hid_p,
        bytes_accessed=4 * (batch * ob_dim + batch * ac_dim
                            + ob_dim * hid_p + hid_p * hid_p + hid_p * ac_dim
                            + 2 * hid_p + ac_dim),
    )

    return pl.pallas_call(
        _mlp_kernel,
        out_shape=jax.ShapeDtypeStruct((batch, ac_dim), jnp.float32),
        grid=grid,
        in_specs=in_specs,
        out_specs=out_spec,
        compiler_params=pltpu.CompilerParams(
            dimension_semantics=("parallel",),  # batch tiles independent -> megacore sharding
        ),
        cost_estimate=cost,
    )(obs, w0, b0, w1, b1, w2, b2)


def init_mlp_policy_params(key, ob_dim, ac_dim, n_layers, size):
    """Deterministic parameter init matching build_mlp's layer shapes (n_layers fixed to 2)."""
    assert n_layers == 2, "kernel is specialized for n_layers=2"
    keys = jax.random.split(key, 6)

    def linear(kw, kb, fan_in, fan_out):
        # PyTorch nn.Linear default: U(-1/sqrt(fan_in), 1/sqrt(fan_in))
        bound = 1.0 / jnp.sqrt(jnp.float32(fan_in))
        w = jax.random.uniform(kw, (fan_in, fan_out), jnp.float32, -bound, bound)
        b = jax.random.uniform(kb, (1, fan_out), jnp.float32, -bound, bound)
        return w, b

    w0, b0 = linear(keys[0], keys[1], ob_dim, size)
    w1, b1 = linear(keys[2], keys[3], size, size)
    w2, b2 = linear(keys[4], keys[5], size, ac_dim)
    return {"w0": w0, "b0": b0, "w1": w1, "b1": b1, "w2": w2, "b2": b2}


def mlp_policy_forward_ref(obs, params):
    """Pure-JAX reference for correctness checking (same precision as the kernel)."""
    hi = jax.lax.Precision.HIGHEST
    h = jnp.tanh(jnp.dot(obs, params["w0"], precision=hi) + params["b0"])
    h = jnp.tanh(jnp.dot(h, params["w1"], precision=hi) + params["b1"])
    return jnp.dot(h, params["w2"], precision=hi) + params["b2"]


if __name__ == "__main__":
    # Small shapes consistent with MLPPolicy(ac_dim=4, ob_dim=16, n_layers=2, size=32)
    batch, ob_dim, ac_dim, n_layers, size = 8, 16, 4, 2, 32

    key = jax.random.PRNGKey(0)
    k_obs, k_params = jax.random.split(key)

    obs = jax.random.normal(k_obs, (batch, ob_dim), dtype=jnp.float32)
    params = init_mlp_policy_params(k_params, ob_dim, ac_dim, n_layers, size)
    prepared = prepare_params(params)  # hoisted, one-time weight padding

    out = jax.block_until_ready(mlp_policy_forward(obs, prepared))

    ref = mlp_policy_forward_ref(obs, params)
    assert out.shape == (batch, ac_dim)
    assert jnp.allclose(out, ref, atol=1e-5, rtol=1e-5), "Pallas output mismatch vs JAX reference"

    # Exercise the multi-step grid and the masked partial final tile (batch not a
    # multiple of the tile size, no batch padding in the wrapper).
    big_batch = 1000
    obs_big = jax.random.normal(jax.random.PRNGKey(1), (big_batch, ob_dim), dtype=jnp.float32)
    out_big = jax.block_until_ready(mlp_policy_forward(obs_big, prepared, block_batch=2048))
    ref_big = mlp_policy_forward_ref(obs_big, params)
    assert out_big.shape == (big_batch, ac_dim)
    assert jnp.allclose(out_big, ref_big, atol=1e-5, rtol=1e-5), "Tiled path mismatch vs JAX reference"
    assert jnp.all(jnp.isfinite(out_big)), "NaN/Inf leaked from masked partial tile"

    print("KERNEL_OK")
</pallas_src>

<mosaic_0001>
module attributes {stable_mosaic.version = 11 : i64} {
  func.func @_mlp_kernel(%arg0: i32, %arg1: memref<8x16xf32, #tpu.memory_space<vmem>>, %arg2: memref<16x128xf32, #tpu.memory_space<vmem>>, %arg3: memref<1x128xf32, #tpu.memory_space<vmem>>, %arg4: memref<128x128xf32, #tpu.memory_space<vmem>>, %arg5: memref<1x128xf32, #tpu.memory_space<vmem>>, %arg6: memref<128x4xf32, #tpu.memory_space<vmem>>, %arg7: memref<1x4xf32, #tpu.memory_space<vmem>>, %arg8: memref<8x4xf32, #tpu.memory_space<vmem>>) attributes {dimension_semantics = [#tpu.dimension_semantics<parallel>], iteration_bounds = array<i64: 1>, scalar_prefetch = 0 : i64, scratch_operands = 0 : i64, tpu.core_type = #tpu.core_type<tc>, window_params = [{transform_indices = @transform_0, window_bounds = array<i64: 8, 16>}, {pipeline_mode = #tpu.pipeline_mode<synchronous>, transform_indices = @transform_1, window_bounds = array<i64: 16, 128>}, {pipeline_mode = #tpu.pipeline_mode<synchronous>, transform_indices = @transform_2, window_bounds = array<i64: 1, 128>}, {pipeline_mode = #tpu.pipeline_mode<synchronous>, transform_indices = @transform_3, window_bounds = array<i64: 128, 128>}, {pipeline_mode = #tpu.pipeline_mode<synchronous>, transform_indices = @transform_4, window_bounds = array<i64: 1, 128>}, {pipeline_mode = #tpu.pipeline_mode<synchronous>, transform_indices = @transform_5, window_bounds = array<i64: 128, 4>}, {pipeline_mode = #tpu.pipeline_mode<synchronous>, transform_indices = @transform_6, window_bounds = array<i64: 1, 4>}, {transform_indices = @transform_7, window_bounds = array<i64: 8, 4>}]} {
    %c0 = arith.constant 0 : index
    %c0_0 = arith.constant 0 : index
    %0 = vector.load %arg1[%c0, %c0_0] : memref<8x16xf32, #tpu.memory_space<vmem>>, vector<8x16xf32>
    %c0_1 = arith.constant 0 : index
    %c0_2 = arith.constant 0 : index
    %1 = vector.load %arg2[%c0_1, %c0_2] : memref<16x128xf32, #tpu.memory_space<vmem>>, vector<16x128xf32>
    %cst = arith.constant dense<0.000000e+00> : vector<8x128xf32>
    %2 = tpu.matmul %0, %1, %cst {dimension_numbers = #tpu.dot_dimension_numbers<[1], [0], [0], [1], [0, 0, 1, 1], [], []>, precision = #tpu.contract_precision<fp32>} : vector<8x16xf32>, vector<16x128xf32>, vector<8x128xf32> -> vector<8x128xf32>
    %c0_3 = arith.constant 0 : index
    %c0_4 = arith.constant 0 : index
    %3 = vector.load %arg3[%c0_3, %c0_4] : memref<1x128xf32, #tpu.memory_space<vmem>>, vector<1x128xf32>
    %4 = vector.broadcast %3 : vector<1x128xf32> to vector<8x128xf32>
    %5 = arith.addf %2, %4 : vector<8x128xf32>
    %6 = math.tanh %5 : vector<8x128xf32>
    %c0_5 = arith.constant 0 : index
    %c0_6 = arith.constant 0 : index
    %7 = vector.load %arg4[%c0_5, %c0_6] : memref<128x128xf32, #tpu.memory_space<vmem>>, vector<128x128xf32>
    %cst_7 = arith.constant dense<0.000000e+00> : vector<8x128xf32>
    %8 = tpu.matmul %6, %7, %cst_7 {dimension_numbers = #tpu.dot_dimension_numbers<[1], [0], [0], [1], [0, 0, 1, 1], [], []>, precision = #tpu.contract_precision<fp32>} : vector<8x128xf32>, vector<128x128xf32>, vector<8x128xf32> -> vector<8x128xf32>
    %c0_8 = arith.constant 0 : index
    %c0_9 = arith.constant 0 : index
    %9 = vector.load %arg5[%c0_8, %c0_9] : memref<1x128xf32, #tpu.memory_space<vmem>>, vector<1x128xf32>
    %10 = vector.broadcast %9 : vector<1x128xf32> to vector<8x128xf32>
    %11 = arith.addf %8, %10 : vector<8x128xf32>
    %12 = math.tanh %11 : vector<8x128xf32>
    %c0_10 = arith.constant 0 : index
    %c0_11 = arith.constant 0 : index
    %13 = vector.load %arg6[%c0_10, %c0_11] : memref<128x4xf32, #tpu.memory_space<vmem>>, vector<128x4xf32>
    %cst_12 = arith.constant dense<0.000000e+00> : vector<8x4xf32>
    %14 = tpu.matmul %12, %13, %cst_12 {dimension_numbers = #tpu.dot_dimension_numbers<[1], [0], [0], [1], [0, 0, 1, 1], [], []>, precision = #tpu.contract_precision<fp32>} : vector<8x128xf32>, vector<128x4xf32>, vector<8x4xf32> -> vector<8x4xf32>
    %c0_13 = arith.constant 0 : index
    %c0_14 = arith.constant 0 : index
    %15 = vector.load %arg7[%c0_13, %c0_14] : memref<1x4xf32, #tpu.memory_space<vmem>>, vector<1x4xf32>
    %16 = vector.broadcast %15 : vector<1x4xf32> to vector<8x4xf32>
    %17 = arith.addf %14, %16 : vector<8x4xf32>
    %c0_15 = arith.constant 0 : index
    %c0_16 = arith.constant 0 : index
    %18 = vector.load %arg8[%c0_15, %c0_16] : memref<8x4xf32, #tpu.memory_space<vmem>>, vector<8x4xf32>
    tpu.vector_store %arg8[%c0_15, %c0_16], %17 {strides = array<i32>} : memref<8x4xf32, #tpu.memory_space<vmem>>, vector<8x4xf32>,
    return
  }
  func.func @transform_0(%arg0: i32) -> (i32, i32) {
    %c0_i32 = arith.constant 0 : i32
    %c0_i32_0 = arith.constant 0 : i32
    return %arg0, %c0_i32 : i32, i32
  }
  func.func @transform_1(%arg0: i32) -> (i32, i32) {
    %c0_i32 = arith.constant 0 : i32
    %c0_i32_0 = arith.constant 0 : i32
    %c0_i32_1 = arith.constant 0 : i32
    return %c0_i32, %c0_i32_0 : i32, i32
  }
  func.func @transform_2(%arg0: i32) -> (i32, i32) {
    %c0_i32 = arith.constant 0 : i32
    %c0_i32_0 = arith.constant 0 : i32
    %c0_i32_1 = arith.constant 0 : i32
    return %c0_i32, %c0_i32_0 : i32, i32
  }
  func.func @transform_3(%arg0: i32) -> (i32, i32) {
    %c0_i32 = arith.constant 0 : i32
    %c0_i32_0 = arith.constant 0 : i32
    %c0_i32_1 = arith.constant 0 : i32
    return %c0_i32, %c0_i32_0 : i32, i32
  }
  func.func @transform_4(%arg0: i32) -> (i32, i32) {
    %c0_i32 = arith.constant 0 : i32
    %c0_i32_0 = arith.constant 0 : i32
    %c0_i32_1 = arith.constant 0 : i32
    return %c0_i32, %c0_i32_0 : i32, i32
  }
  func.func @transform_5(%arg0: i32) -> (i32, i32) {
    %c0_i32 = arith.constant 0 : i32
    %c0_i32_0 = arith.constant 0 : i32
    %c0_i32_1 = arith.constant 0 : i32
    return %c0_i32, %c0_i32_0 : i32, i32
  }
  func.func @transform_6(%arg0: i32) -> (i32, i32) {
    %c0_i32 = arith.constant 0 : i32
    %c0_i32_0 = arith.constant 0 : i32
    %c0_i32_1 = arith.constant 0 : i32
    return %c0_i32, %c0_i32_0 : i32, i32
  }
  func.func @transform_7(%arg0: i32) -> (i32, i32) {
    %c0_i32 = arith.constant 0 : i32
    %c0_i32_0 = arith.constant 0 : i32
    return %arg0, %c0_i32 : i32, i32
  }
}

</mosaic_0001>

<bundles_post_ra>
// kernel: tpu_custom_call.1
= control target key start
LH: loop header
LB: loop body
LE: loop exit
PB: predicated region body
PF: predicated region fallthrough
CT: control target
= control target key end

     0   :  { %12 = vsyncpa [#allocation3], 0  ;;  %s2909_s24 = smov [#allocation2]   ;;  %s3629_s0 = inlined_call_operand.vmem [shape: f32[8,16], index: 0, kind: input, shape index: {}]   ;;  %s3630_s1 = inlined_call_operand.hbm [shape: f32[16,128], index: 1, kind: input, shape index: {}]   ;;  %s3631_s2 = inlined_call_operand.vmem [shape: f32[1,128], index: 2, kind: input, shape index: {}]   ;;  %s3632_s3 = inlined_call_operand.vmem [shape: f32[128,128], index: 3, kind: input, shape index: {}]   ;;  %s3633_s4 = inlined_call_operand.vmem [shape: f32[1,128], index: 4, kind: input, shape index: {}]   ;;  %s3634_s5 = inlined_call_operand.vmem [shape: f32[128,4], index: 5, kind: input, shape index: {}]   ;;  %s3635_s6 = inlined_call_operand.vmem [shape: f32[1,4], index: 6, kind: input, shape index: {}]   ;;  %s3636_s7 = inlined_call_operand.vmem [shape: f32[8,4], index: 7, kind: output, shape index: {}]  }
   0x1   :  { %s20_s25 = sshll.u32 %s2909_s24, 4  ;;  %s2885_s28 = scalar_lea.hbm %s3630_s1, 256  ;;  %s21_s25 = int_to_ptr.vmem [resolvable:$true] %s20_s25 }
   0x2   :  { %p2886_p0 = scmp.ne.s32.totalorder %s3630_s1, %s2885_s28  ;;  %p2889_p1 = scmp.lt.u32.totalorder %s2885_s28, %s3630_s1 }
   0x4   :  { %p2891_p2 = pnand %p2889_p1, %p2886_p0 }
   0x6   :  { %2894 = shalt.err (!%p2891_p2)
}
   0x7   :  { %s2895_s10 = scalar_lea.vmem %s21_s25, 256  ;;  %p2900_p4 = scmp.lt.s32.totalorder %s21_s25, %s21_s25 }
   0x8   :  { %p2896_p3 = scmp.ne.s32.totalorder %s21_s25, %s2895_s10  ;;  %p2901_p5 = scmp.lt.s32.totalorder %s2895_s10, %s2895_s10 }
   0xa   :  { %p2902_p6 = por %p2901_p5, %p2900_p4 }
   0xc   :  { %p2903_p7 = pnand %p2902_p6, %p2896_p3 }
   0xe   :  { %2906 = shalt.err (!%p2903_p7)
}
   0xf   :  { %s2910_s11 = smov 128   ;;  %s2911_s12 = smov 8  }
  0x10   :  { %26 = dma.hbm_to_vmem [thread:$0]  %s3630_s1, 256, %s21_s25, [#allocation3], %s2910_s11, %s2910_s11, %s2911_s12  }
  0x11   :  { %2907 = dma.done.wait [#allocation3], 256  }
  0x12   :  { %2908 = vsyncadd [#allocation3], 4294967040  ;;  %v2912_v0 = vmov 0.0|0.0   ;;  %vm2913_vm0 = vmmov 0   ;;  %v2914_v1 = vmov 0.0   ;;  %vm50_vm1 = vcmask 130048  }
  0x13   :  { %2546 = vmatprep.subr.bf16.mxu0 %v2912_v0  ;;  %2100 = vmatprep.mubr.msk.f32.mxu0 %vm2913_vm0, %v2914_v1  ;;  %v41_v2 = vld [vmem:[#allocation2] sm:$0xff]  ;;  %v42_v3 = vld [vmem:[#allocation2 + $0x8] sm:$0xff]  ;;  %v516_v32 = vld [vmem:[%s3632_s3 + $0x10] sm:$0xff]  ;;  %vm1843_vm2 = vcmask 31744  }
  0x14   :  { %2537 = vmatprep.subr.bf16.mxu1 %v2912_v0  ;;  %2079 = vmatprep.mubr.msk.f32.mxu1 %vm2913_vm0, %v2914_v1  ;;  %v40_v4 = vld [vmem:[%s3629_s0] sm:$0xff]  ;;  %v55_v5 = vand.u32 4294901760, %v41_v2  ;;  %v58_v6 = vand.u32 4294901760, %v42_v3  ;;  %v515_v9 = vld [vmem:[%s3632_s3 + $0x8] sm:$0xff]  ;;  %v517_v33 = vld [vmem:[%s3632_s3 + $0x18] sm:$0xff]  ;;  %v544_v34 = vand.u32 4294901760, %v516_v32 }
  0x15   :  { %v52_v7 = vsel %vm50_vm1, %v40_v4, 0  ;;  %v514_v8 = vld [vmem:[%s3632_s3] sm:$0xff]  ;;  %v541_v12 = vand.u32 4294901760, %v515_v9  ;;  %v547_v35 = vand.u32 4294901760, %v517_v33  ;;  %v519_v40 = vld [vmem:[%s3632_s3 + $0x28] sm:$0xff]  ;;  %v520_v44 = vld [vmem:[%s3632_s3 + $0x30] sm:$0xff] }
  0x16   :  { %v121_v10 = vand.u32 4294901760, %v52_v7  ;;  %v538_v11 = vand.u32 4294901760, %v514_v8  ;;  %v2538_v13 = vpack.c.bf16 %v58_v6, %v55_v5  ;;  %v133_v14 = vsub.f32 %v41_v2, %v55_v5  ;;  %v518_v39 = vld [vmem:[%s3632_s3 + $0x20] sm:$0xff]  ;;  %v521_v45 = vld [vmem:[%s3632_s3 + $0x38] sm:$0xff]  ;;  %v523_v50 = vld [vmem:[%s3632_s3 + $0x48] sm:$0xff] }
  0x17   :  { %v140_v15 = vsub.f32 %v42_v3, %v58_v6  ;;  %v2984_v18 = vsub.f32 %v515_v9, %v541_v12  ;;  %v3014_v36 = vpack.c.bf16 %v547_v35, %v544_v34  ;;  %v3016_v37 = vsub.f32 %v516_v32, %v544_v34  ;;  %v522_v49 = vld [vmem:[%s3632_s3 + $0x40] sm:$0xff]  ;;  %v524_v54 = vld [vmem:[%s3632_s3 + $0x50] sm:$0xff]  ;;  %v525_v55 = vld [vmem:[%s3632_s3 + $0x58] sm:$0xff] }
  0x18   :  { %v122_v16 = vsub.f32 %v52_v7, %v121_v10  ;;  %v2982_v17 = vsub.f32 %v514_v8, %v538_v11  ;;  %2548 = vmatpush3.bf16.msra.mxu0 %v2538_v13  ;;  %2539 = vmatpush3.bf16.msra.mxu1 %v2538_v13  ;;  %v134_v19 = vand.u32 4294901760, %v133_v14  ;;  %v3000_v31 = vpack.c.bf16 %v541_v12, %v538_v11  ;;  %v526_v59 = vld [vmem:[%s3632_s3 + $0x60] sm:$0xff]  ;;  %v527_v60 = vld [vmem:[%s3632_s3 + $0x68] sm:$0xff]  ;;  %v528_v5 = vld [vmem:[%s3632_s3 + $0x70] sm:$0xff] }
  0x19   :  { %v141_v20 = vand.u32 4294901760, %v140_v15  ;;  %2540 = vmatprep.subr.bf16.mxu1 %v2912_v0  ;;  %2549 = vmatprep.subr.bf16.mxu0 %v2912_v0  ;;  %v2544_v30 = vpack.c.bf16 %v140_v15, %v133_v14  ;;  %v3018_v38 = vsub.f32 %v517_v33, %v547_v35  ;;  %v550_v41 = vand.u32 4294901760, %v518_v39  ;;  %v529_v6 = vld [vmem:[%s3632_s3 + $0x78] sm:$0xff] }
  0x1a   :  { %v123_v21 = vand.u32 4294901760, %v122_v16  ;;  %v135_v22 = vsub.f32 %v133_v14, %v134_v19  ;;  %v553_v42 = vand.u32 4294901760, %v519_v40  ;;  %v556_v46 = vand.u32 4294901760, %v520_v44 }
  0x1b   :  { %v142_v23 = vsub.f32 %v140_v15, %v141_v20  ;;  %v2550_v24 = vpack.c.bf16 %v141_v20, %v134_v19  ;;  %v559_v47 = vand.u32 4294901760, %v521_v45  ;;  %v562_v51 = vand.u32 4294901760, %v522_v49 }
  0x1c   :  { %2101 = vmatmul.mubr.f32.vlgmr.msra.gmra.mrb[0].mxu0 %v123_v21  ;;  %v124_v25 = vsub.f32 %v122_v16, %v123_v21  ;;  %v136_v26 = vand.u32 4294901760, %v135_v22  ;;  %v3028_v43 = vpack.c.bf16 %v553_v42, %v550_v41  ;;  %v565_v52 = vand.u32 4294901760, %v523_v50 }
  0x1d   :  { %v143_v27 = vand.u32 4294901760, %v142_v23  ;;  %2551 = vmatpush3.bf16.msra.mxu0 %v2550_v24  ;;  %2107 = vmatprep.mubr.msk.f32.mxu0 %vm2913_vm0, %v2914_v1  ;;  %v3038_v48 = vpack.c.bf16 %v559_v47, %v556_v46  ;;  %v568_v56 = vand.u32 4294901760, %v524_v54  ;;  %v571_v57 = vand.u32 4294901760, %v525_v55 }
  0x1e   :  { %v125_v28 = vand.u32 4294901760, %v124_v25  ;;  %2552 = vmatprep.subr.bf16.mxu0 %v2912_v0  ;;  %v3048_v53 = vpack.c.bf16 %v565_v52, %v562_v51  ;;  %v574_v61 = vand.u32 4294901760, %v526_v59  ;;  %v577_v62 = vand.u32 4294901760, %v527_v60 }
  0x1f   :  { %v2541_v29 = vpack.c.bf16 %v143_v27, %v136_v26  ;;  %v3058_v58 = vpack.c.bf16 %v571_v57, %v568_v56  ;;  %v3068_v63 = vsub.f32 %v518_v39, %v550_v41  ;;  %v3070_v2 = vsub.f32 %v519_v40, %v553_v42 }
  0x20   :  { %2080 = vmatmul.mubr.f32.vlgmr.msra.gmra.mrb[0].mxu1 %v125_v28  ;;  %v3072_v3 = vsub.f32 %v520_v44, %v556_v46  ;;  %v3074_v4 = vsub.f32 %v521_v45, %v559_v47  ;;  %v3082_v7 = vsub.f32 %v522_v49, %v562_v51  ;;  %v3084_v8 = vsub.f32 %v523_v50, %v565_v52 }
  0x21   :  { %2542 = vmatpush3.bf16.msra.mxu1 %v2541_v29  ;;  %2086 = vmatprep.mubr.msk.f32.mxu1 %vm2913_vm0, %v2914_v1  ;;  %v3086_v9 = vsub.f32 %v524_v54, %v568_v56  ;;  %v3090_v11 = vpack.c.bf16 %v577_v62, %v574_v61  ;;  %v3092_v12 = vsub.f32 %v526_v59, %v574_v61  ;;  %v580_v14 = vand.u32 4294901760, %v528_v5 }
  0x22   :  { %2543 = vmatprep.subr.bf16.mxu1 %v2912_v0  ;;  %v583_v15 = vand.u32 4294901760, %v529_v6  ;;  %v638_v19 = vand.u32 4294901760, %v2984_v18  ;;  %v645_v27 = vand.u32 4294901760, %v3016_v37  ;;  %v652_v28 = vand.u32 4294901760, %v3018_v38 }
  0x23   :  { %v3099_v20 = vsub.f32 %v528_v5, %v580_v14  ;;  %v659_v35 = vand.u32 4294901760, %v3068_v63  ;;  %v666_v39 = vand.u32 4294901760, %v3070_v2  ;;  %v673_v46 = vand.u32 4294901760, %v3072_v3 }
  0x24   :  { %2108 = vmatmul.mubr.f32.vlgmr.msra.gmra.mrb[0].mxu0 %v121_v10  ;;  %v3102_v21 = vpack.c.bf16 %v583_v15, %v580_v14  ;;  %v3104_v22 = vsub.f32 %v529_v6, %v583_v15  ;;  %v639_v24 = vsub.f32 %v2984_v18, %v638_v19  ;;  %v653_v32 = vsub.f32 %v3018_v38, %v652_v28 }
  0x25   :  { %2554 = vmatpush3.bf16.msra.mxu0 %v2538_v13  ;;  %2114 = vmatprep.mubr.msk.f32.mxu0 %vm2913_vm0, %v2914_v1  ;;  %v3094_v13 = vsub.f32 %v527_v60, %v577_v62  ;;  %v660_v41 = vsub.f32 %v3068_v63, %v659_v35  ;;  %v667_v42 = vsub.f32 %v3070_v2, %v666_v39  ;;  %v680_v47 = vand.u32 4294901760, %v3074_v4 }
  0x26   :  { %2699 = vmatprep.subr.bf16.mxu0 %v2912_v0  ;;  %v640_v26 = vand.u32 4294901760, %v639_v24  ;;  %v654_v34 = vand.u32 4294901760, %v653_v32  ;;  %v674_v50 = vsub.f32 %v3072_v3, %v673_v46  ;;  %v694_v56 = vand.u32 4294901760, %v3084_v8 }
  0x27   :  { %v661_v44 = vand.u32 4294901760, %v660_v41  ;;  %v668_v45 = vand.u32 4294901760, %v667_v42  ;;  %v681_v51 = vsub.f32 %v3074_v4, %v680_v47  ;;  %v3642_v5 = vand.u32 4294901760, %v3086_v9 }
  0x28   :  { %2087 = vmatmul.mubr.f32.vlgmr.msra.gmra.mrb[0].mxu1 %v121_v10  ;;  %v675_v52 = vand.u32 4294901760, %v674_v50  ;;  %v695_v60 = vsub.f32 %v3084_v8, %v694_v56 }
  0x29   :  { %2545 = vmatpush3.bf16.msra.mxu1 %v2544_v30  ;;  %2093 = vmatprep.mubr.msk.f32.mxu1 %vm2913_vm0, %v2914_v1  ;;  %v646_v30 = vsub.f32 %v3016_v37, %v645_v27  ;;  %v2586_v49 = vpack.c.bf16 %v668_v45, %v661_v44  ;;  %v682_v54 = vand.u32 4294901760, %v681_v51  ;;  %v702_v15 = vsub.f32 %v3086_v9, %v3642_v5 }
  0x2a   :  { %2555 = vmatprep.subr.bf16.mxu1 %v2912_v0  ;;  %v696_v62 = vand.u32 4294901760, %v695_v60  ;;  %v3638_v44 = vand.u32 4294901760, %v3099_v20  ;;  %v3637_v45 = vand.u32 4294901760, %v3104_v22 }
  0x2b   :  { %v647_v33 = vand.u32 4294901760, %v646_v30  ;;  %v703_v24 = vand.u32 4294901760, %v702_v15  ;;  %v3639_v30 = vand.u32 4294901760, %v3094_v13  ;;  %v2610_v15 = vpack.c.bf16 %v3070_v2, %v3068_v63 }
  0x2c   :  { %2115 = vmatmul.mubr.f32.vlgmr.msra.gmra.mrb[0].mxu0 %v121_v10  ;;  %v3088_v10 = vsub.f32 %v525_v55, %v571_v57  ;;  %v687_v55 = vand.u32 4294901760, %v3082_v7  ;;  %v2589_v57 = vpack.c.bf16 %v682_v54, %v675_v52  ;;  %v730_v51 = vsub.f32 %v3099_v20, %v3638_v44 }
  0x2d   :  { %2359 = vmatprep.mubr.msk.f32.mxu0 %vm2913_vm0, %v2914_v1  ;;  %v3126_v40 = vpack.c.bf16 %v654_v34, %v647_v33  ;;  %v723_v34 = vsub.f32 %v3094_v13, %v3639_v30  ;;  %v737_v52 = vsub.f32 %v3104_v22, %v3637_v45 }
  0x2e   :  { %v688_v59 = vsub.f32 %v3082_v7, %v687_v55  ;;  %v3641_v6 = vand.u32 4294901760, %v3088_v10  ;;  %v731_v54 = vand.u32 4294901760, %v730_v51  ;;  %v1850_v51 = vld [vmem:[%s3631_s2] ss:$0 sm:$0xff]  ;;  %v3648_v63 = vand.u32 4294901760, %v3088_v10 }
  0x2f   :  { %v724_v42 = vand.u32 4294901760, %v723_v34  ;;  %v2625_v34 = vpack.c.bf16 %v3104_v22, %v3099_v20 }
  0x30   :  { %2094 = vmatmul.mubr.f32.vlgmr.msra.gmra.mrb[0].mxu1 %v122_v16  ;;  %v631_v16 = vand.u32 4294901760, %v2982_v17  ;;  %v689_v61 = vand.u32 4294901760, %v688_v59  ;;  %v738_v59 = vand.u32 4294901760, %v737_v52 }
  0x31   :  { %2557 = vmatpush3.bf16.msra.mxu1 %v3000_v31  ;;  %2149 = vmatprep.mubr.msk.f32.mxu1 %vm2913_vm0, %v2914_v1 }
  0x32   :  { %2558 = vmatprep.subr.bf16.mxu1 %v2912_v0  ;;  %v632_v23 = vsub.f32 %v2982_v17, %v631_v16  ;;  %v2592_v14 = vpack.c.bf16 %v696_v62, %v689_v61  ;;  %v2601_v60 = vpack.c.bf16 %v738_v59, %v731_v54  ;;  %v2604_v61 = vpack.c.bf16 %v2984_v18, %v2982_v17 }
  0x33   :  { %v2607_v62 = vpack.c.bf16 %v3018_v38, %v3016_v37  ;;  %v2658_v17 = vpack.c.bf16 %v666_v39, %v659_v35  ;;  %v2661_v18 = vpack.c.bf16 %v680_v47, %v673_v46  ;;  %v2664_v37 = vpack.c.bf16 %v694_v56, %v687_v55  ;;  %v1190_v35 = vld [vmem:[%s3634_s5 + $0x58] sm:$0xff]  ;;  %v1191_v55 = vld [vmem:[%s3634_s5 + $0x60] sm:$0xff]  ;;  %v1192_v56 = vld [vmem:[%s3634_s5 + $0x68] sm:$0xff] }
  0x34   :  { %v633_v25 = vand.u32 4294901760, %v632_v23  ;;  %v709_v23 = vsub.f32 %v3088_v10, %v3641_v6  ;;  %v3647_v38 = vand.u32 4294901760, %v3086_v9  ;;  %v1236_v46 = vand.u32 4294901760, %v1190_v35 }
  0x35   :  { %2560 = vmatpush3.bf16.msra.mxu1 %v3014_v36 }
  0x36   :  { %2561 = vmatprep.subr.bf16.mxu1 %v2912_v0  ;;  %v3116_v29 = vpack.c.bf16 %v640_v26, %v633_v25  ;;  %v710_v25 = vand.u32 4294901760, %v709_v23  ;;  %v3640_v26 = vand.u32 4294901760, %v3092_v12  ;;  %v2613_v23 = vpack.c.bf16 %v3074_v4, %v3072_v3 }
  0x37   :  { %v2667_v2 = vpack.c.bf16 %v3648_v63, %v3647_v38  ;;  %v3649_v3 = vand.u32 4294901760, %v3092_v12  ;;  %v3650_v4 = vand.u32 4294901760, %v3094_v13 }
  0x38   :  { %v2595_v32 = vpack.c.bf16 %v710_v25, %v703_v24  ;;  %v716_v33 = vsub.f32 %v3092_v12, %v3640_v26  ;;  %v2616_v24 = vpack.c.bf16 %v3084_v8, %v3082_v7  ;;  %v2619_v25 = vpack.c.bf16 %v3088_v10, %v3086_v9  ;;  %v1186_v9 = vld [vmem:[%s3634_s5 + $0x38] sm:$0xff] }
  0x39   :  { %2563 = vmatpush3.bf16.msra.mxu1 %v3028_v43  ;;  %v3651_v7 = vand.u32 4294901760, %v3099_v20  ;;  %v3652_v8 = vand.u32 4294901760, %v3104_v22  ;;  %v1188_v20 = vld [vmem:[%s3634_s5 + $0x48] sm:$0xff] }
  0x3a   :  { %2564 = vmatprep.subr.bf16.mxu1 %v2912_v0  ;;  %v717_v41 = vand.u32 4294901760, %v716_v33  ;;  %v2622_v33 = vpack.c.bf16 %v3094_v13, %v3092_v12  ;;  %v1187_v13 = vld [vmem:[%s3634_s5 + $0x40] sm:$0xff]  ;;  %v1230_v22 = vand.u32 4294901760, %v1188_v20 }
  0x3c   :  { %v2598_v50 = vpack.c.bf16 %v724_v42, %v717_v41 }
  0x3d   :  { %2566 = vmatpush3.bf16.msra.mxu1 %v3038_v48 }
  0x3e   :  { %2567 = vmatprep.subr.bf16.mxu1 %v2912_v0 }
  0x41   :  { %2569 = vmatpush3.bf16.msra.mxu1 %v3048_v53 }
  0x42   :  { %2570 = vmatprep.subr.bf16.mxu1 %v2912_v0 }
  0x45   :  { %2572 = vmatpush3.bf16.msra.mxu1 %v3058_v58 }
  0x46   :  { %2573 = vmatprep.subr.bf16.mxu1 %v2912_v0 }
  0x49   :  { %2575 = vmatpush3.bf16.msra.mxu1 %v3090_v11 }
  0x4a   :  { %2576 = vmatprep.subr.bf16.mxu1 %v2912_v0 }
  0x4d   :  { %2578 = vmatpush3.bf16.msra.mxu1 %v3102_v21 }
  0x4e   :  { %2579 = vmatprep.subr.bf16.mxu1 %v2912_v0 }
  0xff   :  { %v509_v41 = vpop.f32.mrb[0].mxu0 }
 0x100   :  { %v2116_v42 = vpop.f32.mrb[1].mxu0 }
 0x103   :  { %v284_v52 = vpop.f32.mrb[0].mxu1 }
 0x104   :  { %v2843_v54 = vadd.f32 %v1850_v51, %v284_v52  ;;  %v2095_v59 = vpop.f32.mrb[1].mxu1 }
 0x105   :  { %v3412_v59 = vsub.f32 %v1188_v20, %v1230_v22 }
 0x106   :  { %v2844_v45 = vadd.f32 %v2843_v54, %v509_v41 }
 0x108   :  { %2881 = vtanh.f32 %v2844_v45 }
 0x112   :  { %v2882_v44 = vpop.eup %2881 }
 0x113   :  { %v3193_v30 = vand.u32 4294901760, %v2882_v44 }
 0x115   :  { %v3196_v26 = vsub.f32 %v2882_v44, %v3193_v30 }
 0x117   :  { %v620_v6 = vand.u32 4294901760, %v3196_v26 }
 0x119   :  { %v621_v42 = vsub.f32 %v3196_v26, %v620_v6 }
 0x11b   :  { %v622_v5 = vand.u32 4294901760, %v621_v42 }
 0x11d   :  { %2150 = vmatmul.mubr.f32.vlgmr.msra.gmra.mrb[2].mxu1 %v622_v5 }
 0x11e   :  { %2581 = vmatpush3.bf16.msra.mxu1 %v3116_v29  ;;  %2184 = vmatprep.mubr.msk.f32.mxu1 %vm2913_vm0, %v2914_v1  ;;  %v1179_v29 = vld [vmem:[%s3634_s5] sm:$0xff] }
 0x11f   :  { %2582 = vmatprep.subr.bf16.mxu1 %v2912_v0 }
 0x122   :  { %2584 = vmatpush3.bf16.msra.mxu1 %v3126_v40  ;;  %v1180_v40 = vld [vmem:[%s3634_s5 + $0x8] sm:$0xff] }
 0x123   :  { %2585 = vmatprep.subr.bf16.mxu1 %v2912_v0  ;;  %v1206_v5 = vand.u32 4294901760, %v1180_v40 }
 0x126   :  { %2587 = vmatpush3.bf16.msra.mxu1 %v2586_v49  ;;  %v1181_v49 = vld [vmem:[%s3634_s5 + $0x10] sm:$0xff] }
 0x127   :  { %2588 = vmatprep.subr.bf16.mxu1 %v2912_v0 }
 0x12a   :  { %2590 = vmatpush3.bf16.msra.mxu1 %v2589_v57  ;;  %v1203_v57 = vand.u32 4294901760, %v1179_v29 }
 0x12b   :  { %2591 = vmatprep.subr.bf16.mxu1 %v2912_v0 }
 0x12c   :  { %v3230_v45 = vpack.c.bf16 %v1206_v5, %v1203_v57 }
 0x12e   :  { %2593 = vmatpush3.bf16.msra.mxu1 %v2592_v14  ;;  %v1182_v14 = vld [vmem:[%s3634_s5 + $0x18] sm:$0xff]  ;;  %2701 = vmatpush3.bf16.msra.mxu0 %v3230_v45 }
 0x12f   :  { %2594 = vmatprep.subr.bf16.mxu1 %v2912_v0  ;;  %v1212_v44 = vand.u32 4294901760, %v1182_v14  ;;  %2702 = vmatprep.subr.bf16.mxu0 %v2912_v0 }
 0x131   :  { %v3238_v41 = vsub.f32 %v1182_v14, %v1212_v44 }
 0x132   :  { %2596 = vmatpush3.bf16.msra.mxu1 %v2595_v32  ;;  %v1209_v32 = vand.u32 4294901760, %v1181_v49 }
 0x133   :  { %2597 = vmatprep.subr.bf16.mxu1 %v2912_v0  ;;  %v1317_v38 = vand.u32 4294901760, %v3238_v41 }
 0x134   :  { %v3241_v51 = vpack.c.bf16 %v1212_v44, %v1209_v32 }
 0x136   :  { %2599 = vmatpush3.bf16.msra.mxu1 %v2598_v50  ;;  %v3232_v50 = vsub.f32 %v1179_v29, %v1203_v57  ;;  %2704 = vmatpush3.bf16.msra.mxu0 %v3241_v51  ;;  %v3416_v29 = vsub.f32 %v1190_v35, %v1236_v46 }
 0x137   :  { %2600 = vmatprep.subr.bf16.mxu1 %v2912_v0  ;;  %2705 = vmatprep.subr.bf16.mxu0 %v2912_v0 }
 0x138   :  { %v1296_v14 = vand.u32 4294901760, %v3232_v50 }
 0x13a   :  { %2602 = vmatpush3.bf16.msra.mxu1 %v2601_v60  ;;  %v3234_v60 = vsub.f32 %v1180_v40, %v1206_v5 }
 0x13b   :  { %2603 = vmatprep.subr.bf16.mxu1 %v2912_v0 }
 0x13d   :  { %2185 = vmatmul.mubr.f32.vlgmr.msra.gmra.mrb[2].mxu1 %v3193_v30 }
 0x13e   :  { %2605 = vmatpush3.bf16.msra.mxu1 %v2604_v61  ;;  %2219 = vmatprep.mubr.msk.f32.mxu1 %vm2913_vm0, %v2914_v1  ;;  %v3236_v61 = vsub.f32 %v1181_v49, %v1209_v32  ;;  %v1303_v32 = vand.u32 4294901760, %v3234_v60 }
 0x13f   :  { %2606 = vmatprep.subr.bf16.mxu1 %v2912_v0 }
 0x142   :  { %2608 = vmatpush3.bf16.msra.mxu1 %v2607_v62  ;;  %v2652_v62 = vpack.c.bf16 %v638_v19, %v631_v16  ;;  %v2670_v16 = vpack.c.bf16 %v3650_v4, %v3649_v3  ;;  %v2673_v19 = vpack.c.bf16 %v3652_v8, %v3651_v7  ;;  %v1318_v4 = vsub.f32 %v3238_v41, %v1317_v38 }
 0x143   :  { %2609 = vmatprep.subr.bf16.mxu1 %v2912_v0 }
 0x144   :  { %v1319_v8 = vand.u32 4294901760, %v1318_v4 }
 0x146   :  { %2611 = vmatpush3.bf16.msra.mxu1 %v2610_v15  ;;  %v2655_v15 = vpack.c.bf16 %v652_v28, %v645_v27  ;;  %v1189_v28 = vld [vmem:[%s3634_s5 + $0x50] sm:$0xff] }
 0x147   :  { %2612 = vmatprep.subr.bf16.mxu1 %v2912_v0  ;;  %v1233_v39 = vand.u32 4294901760, %v1189_v28 }
 0x149   :  { %v3383_v47 = vpack.c.bf16 %v1236_v46, %v1233_v39  ;;  %v3414_v42 = vsub.f32 %v1189_v28, %v1233_v39  ;;  %v1359_v39 = vand.u32 4294901760, %v3412_v59 }
 0x14a   :  { %2614 = vmatpush3.bf16.msra.mxu1 %v2613_v23  ;;  %v1193_v23 = vld [vmem:[%s3634_s5 + $0x70] sm:$0xff] }
 0x14b   :  { %2615 = vmatprep.subr.bf16.mxu1 %v2912_v0  ;;  %v1245_v57 = vand.u32 4294901760, %v1193_v23 }
 0x14e   :  { %2617 = vmatpush3.bf16.msra.mxu1 %v2616_v24  ;;  %v1194_v24 = vld [vmem:[%s3634_s5 + $0x78] sm:$0xff] }
 0x14f   :  { %2618 = vmatprep.subr.bf16.mxu1 %v2912_v0  ;;  %v1248_v5 = vand.u32 4294901760, %v1194_v24 }
 0x151   :  { %v3425_v44 = vpack.c.bf16 %v1248_v5, %v1245_v57 }
 0x152   :  { %2620 = vmatpush3.bf16.msra.mxu1 %v2619_v25 }
 0x153   :  { %2621 = vmatprep.subr.bf16.mxu1 %v2912_v0 }
 0x156   :  { %2623 = vmatpush3.bf16.msra.mxu1 %v2622_v33 }
 0x157   :  { %2624 = vmatprep.subr.bf16.mxu1 %v2912_v0 }
 0x15a   :  { %2626 = vmatpush3.bf16.msra.mxu1 %v2625_v34 }
 0x15b   :  { %2627 = vmatprep.subr.bf16.mxu1 %v2912_v0 }
 0x15d   :  { %2220 = vmatmul.mubr.f32.vlgmr.msra.gmra.mrb[2].mxu1 %v3196_v26  ;;  %v1242_v26 = vand.u32 4294901760, %v1192_v56 }
 0x15e   :  { %2629 = vmatpush3.bf16.msra.mxu1 %v3000_v31  ;;  %2254 = vmatprep.mubr.msk.f32.mxu1 %vm2913_vm0, %v2914_v1 }
 0x15f   :  { %2630 = vmatprep.subr.bf16.mxu1 %v2912_v0  ;;  %v3421_v49 = vsub.f32 %v1192_v56, %v1242_v26  ;;  %v1360_v56 = vsub.f32 %v3412_v59, %v1359_v39 }
 0x162   :  { %2632 = vmatpush3.bf16.msra.mxu1 %v3014_v36 }
 0x163   :  { %2633 = vmatprep.subr.bf16.mxu1 %v2912_v0 }
 0x166   :  { %2635 = vmatpush3.bf16.msra.mxu1 %v3028_v43 }
 0x167   :  { %2636 = vmatprep.subr.bf16.mxu1 %v2912_v0 }
 0x16a   :  { %2638 = vmatpush3.bf16.msra.mxu1 %v3038_v48 }
 0x16b   :  { %2639 = vmatprep.subr.bf16.mxu1 %v2912_v0 }
 0x16e   :  { %2641 = vmatpush3.bf16.msra.mxu1 %v3048_v53 }
 0x16f   :  { %2642 = vmatprep.subr.bf16.mxu1 %v2912_v0 }
 0x172   :  { %2644 = vmatpush3.bf16.msra.mxu1 %v3058_v58 }
 0x173   :  { %2645 = vmatprep.subr.bf16.mxu1 %v2912_v0 }
 0x176   :  { %2647 = vmatpush3.bf16.msra.mxu1 %v3090_v11 }
 0x177   :  { %2648 = vmatprep.subr.bf16.mxu1 %v2912_v0 }
 0x17a   :  { %2650 = vmatpush3.bf16.msra.mxu1 %v3102_v21 }
 0x17b   :  { %2651 = vmatprep.subr.bf16.mxu1 %v2912_v0 }
 0x17d   :  { %2255 = vmatmul.mubr.f32.vlgmr.msra.gmra.mrb[2].mxu1 %v620_v6  ;;  %v1239_v6 = vand.u32 4294901760, %v1191_v55 }
 0x17e   :  { %2653 = vmatpush3.bf16.msra.mxu1 %v2652_v62  ;;  %2289 = vmatprep.mubr.msk.f32.mxu1 %vm2913_vm0, %v2914_v1  ;;  %v3427_v62 = vsub.f32 %v1193_v23, %v1245_v57  ;;  %v1366_v23 = vand.u32 4294901760, %v3414_v42 }
 0x17f   :  { %2654 = vmatprep.subr.bf16.mxu1 %v2912_v0  ;;  %v3419_v40 = vsub.f32 %v1191_v55, %v1239_v6 }
 0x182   :  { %2656 = vmatpush3.bf16.msra.mxu1 %v2655_v15  ;;  %v3429_v15 = vsub.f32 %v1194_v24, %v1248_v5  ;;  %v1373_v24 = vand.u32 4294901760, %v3416_v29  ;;  %v1367_v5 = vsub.f32 %v3414_v42, %v1366_v23 }
 0x183   :  { %2657 = vmatprep.subr.bf16.mxu1 %v2912_v0 }
 0x186   :  { %2659 = vmatpush3.bf16.msra.mxu1 %v2658_v17  ;;  %v1297_v17 = vsub.f32 %v3232_v50, %v1296_v14 }
 0x187   :  { %2660 = vmatprep.subr.bf16.mxu1 %v2912_v0 }
 0x188   :  { %v1298_v63 = vand.u32 4294901760, %v1297_v17  ;;  %v1374_v17 = vsub.f32 %v3416_v29, %v1373_v24 }
 0x18a   :  { %2662 = vmatpush3.bf16.msra.mxu1 %v2661_v18  ;;  %v1304_v18 = vsub.f32 %v3234_v60, %v1303_v32 }
 0x18b   :  { %2663 = vmatprep.subr.bf16.mxu1 %v2912_v0 }
 0x18e   :  { %2665 = vmatpush3.bf16.msra.mxu1 %v2664_v37  ;;  %v1310_v37 = vand.u32 4294901760, %v3236_v61 }
 0x18f   :  { %2666 = vmatprep.subr.bf16.mxu1 %v2912_v0 }
 0x190   :  { %v1311_v3 = vsub.f32 %v3236_v61, %v1310_v37 }
 0x192   :  { %2668 = vmatpush3.bf16.msra.mxu1 %v2667_v2  ;;  %v1305_v2 = vand.u32 4294901760, %v1304_v18  ;;  %v1312_v7 = vand.u32 4294901760, %v1311_v3  ;;  %v1368_v18 = vand.u32 4294901760, %v1367_v5  ;;  %v3645_v3 = vand.u32 4294901760, %v3421_v49 }
 0x193   :  { %2669 = vmatprep.subr.bf16.mxu1 %v2912_v0 }
 0x196   :  { %2671 = vmatpush3.bf16.msra.mxu1 %v2670_v16  ;;  %v3447_v16 = vpack.c.bf16 %v1305_v2, %v1298_v63  ;;  %v1375_v63 = vand.u32 4294901760, %v1374_v17  ;;  %v3646_v2 = vand.u32 4294901760, %v3419_v40 }
 0x197   :  { %2672 = vmatprep.subr.bf16.mxu1 %v2912_v0 }
 0x198   :  { %v2739_v4 = vpack.c.bf16 %v1375_v63, %v1368_v18  ;;  %v2763_v63 = vpack.c.bf16 %v3416_v29, %v3414_v42 }
 0x19a   :  { %2674 = vmatpush3.bf16.msra.mxu1 %v2673_v19 }
 0x19b   :  { %2675 = vmatprep.subr.bf16.mxu1 %v2912_v0 }
 0x19d   :  { %2290 = vmatmul.mubr.f32.vlgmr.msra.gmra.mrb[2].mxu1 %v3193_v30 }
 0x19e   :  { %2677 = vmatpush3.bf16.msra.mxu1 %v3000_v31  ;;  %2324 = vmatprep.mubr.msk.f32.mxu1 %vm2913_vm0, %v2914_v1  ;;  %v1183_v31 = vld [vmem:[%s3634_s5 + $0x20] sm:$0xff] }
 0x19f   :  { %2678 = vmatprep.subr.bf16.mxu1 %v2912_v0 }
 0x1a2   :  { %2680 = vmatpush3.bf16.msra.mxu1 %v3014_v36  ;;  %v1184_v36 = vld [vmem:[%s3634_s5 + $0x28] sm:$0xff] }
 0x1a3   :  { %2681 = vmatprep.subr.bf16.mxu1 %v2912_v0 }
 0x1a6   :  { %2683 = vmatpush3.bf16.msra.mxu1 %v3028_v43  ;;  %v1215_v43 = vand.u32 4294901760, %v1183_v31 }
 0x1a7   :  { %2684 = vmatprep.subr.bf16.mxu1 %v2912_v0 }
 0x1a8   :  { %v3401_v25 = vsub.f32 %v1183_v31, %v1215_v43 }
 0x1aa   :  { %2686 = vmatpush3.bf16.msra.mxu1 %v3038_v48  ;;  %v1218_v48 = vand.u32 4294901760, %v1184_v36  ;;  %v1324_v19 = vand.u32 4294901760, %v3401_v25 }
 0x1ab   :  { %2687 = vmatprep.subr.bf16.mxu1 %v2912_v0 }
 0x1ac   :  { %v3403_v33 = vsub.f32 %v1184_v36, %v1218_v48  ;;  %v3451_v36 = vpack.c.bf16 %v1319_v8, %v1312_v7  ;;  %v1381_v7 = vsub.f32 %v3419_v40, %v3646_v2  ;;  %v1388_v8 = vsub.f32 %v3421_v49, %v3645_v3 }
 0x1ae   :  { %2689 = vmatpush3.bf16.msra.mxu1 %v3048_v53  ;;  %v3353_v53 = vpack.c.bf16 %v1218_v48, %v1215_v43  ;;  %v1331_v31 = vand.u32 4294901760, %v3403_v33  ;;  %v1325_v43 = vsub.f32 %v3401_v25, %v1324_v19  ;;  %v2754_v5 = vpack.c.bf16 %v3403_v33, %v3401_v25 }
 0x1af   :  { %2690 = vmatprep.subr.bf16.mxu1 %v2912_v0  ;;  %v3653_v25 = vand.u32 4294901760, %v3419_v40 }
 0x1b0   :  { %2707 = vmatpush3.bf16.msra.mxu0 %v3353_v53  ;;  %v1332_v48 = vsub.f32 %v3403_v33, %v1331_v31  ;;  %v3654_v33 = vand.u32 4294901760, %v3421_v49 }
 0x1b1   :  { %2708 = vmatprep.subr.bf16.mxu0 %v2912_v0 }
 0x1b2   :  { %2692 = vmatpush3.bf16.msra.mxu1 %v3058_v58  ;;  %v1185_v58 = vld [vmem:[%s3634_s5 + $0x30] sm:$0xff] }
 0x1b3   :  { %2693 = vmatprep.subr.bf16.mxu1 %v2912_v0  ;;  %v1221_v10 = vand.u32 4294901760, %v1185_v58 }
 0x1b5   :  { %v3405_v34 = vsub.f32 %v1185_v58, %v1221_v10  ;;  %v1326_v58 = vand.u32 4294901760, %v1325_v43  ;;  %v1382_v43 = vand.u32 4294901760, %v1381_v7  ;;  %v2766_v7 = vpack.c.bf16 %v3421_v49, %v3419_v40 }
 0x1b6   :  { %2695 = vmatpush3.bf16.msra.mxu1 %v3090_v11  ;;  %v1224_v11 = vand.u32 4294901760, %v1186_v9 }
 0x1b7   :  { %2696 = vmatprep.subr.bf16.mxu1 %v2912_v0 }
 0x1b8   :  { %v3363_v12 = vpack.c.bf16 %v1224_v11, %v1221_v10  ;;  %v3407_v52 = vsub.f32 %v1186_v9, %v1224_v11  ;;  %v1338_v9 = vand.u32 4294901760, %v3405_v34  ;;  %v1333_v11 = vand.u32 4294901760, %v1332_v48 }
 0x1b9   :  { %v1389_v48 = vand.u32 4294901760, %v1388_v8  ;;  %v2769_v8 = vpack.c.bf16 %v3429_v15, %v3427_v62 }
 0x1ba   :  { %2698 = vmatpush3.bf16.msra.mxu1 %v3102_v21  ;;  %2710 = vmatpush3.bf16.msra.mxu0 %v3363_v12  ;;  %v1227_v21 = vand.u32 4294901760, %v1187_v13  ;;  %v1345_v10 = vand.u32 4294901760, %v3407_v52  ;;  %v2757_v17 = vpack.c.bf16 %v3407_v52, %v3405_v34 }
 0x1bb   :  { %2711 = vmatprep.subr.bf16.mxu0 %v2912_v0 }
 0x1bc   :  { %v3373_v27 = vpack.c.bf16 %v1230_v22, %v1227_v21  ;;  %v3410_v54 = vsub.f32 %v1187_v13, %v1227_v21  ;;  %v1339_v13 = vsub.f32 %v3405_v34, %v1338_v9  ;;  %v1346_v20 = vsub.f32 %v3407_v52, %v1345_v10 }
 0x1bd   :  { %2325 = vmatmul.mubr.f32.vlgmr.msra.gmra.mrb[2].mxu1 %v3193_v30  ;;  %v3393_v30 = vpack.c.bf16 %v1242_v26, %v1239_v6  ;;  %v2730_v21 = vpack.c.bf16 %v1333_v11, %v1326_v58  ;;  %v1361_v26 = vand.u32 4294901760, %v1360_v56  ;;  %v3644_v58 = vand.u32 4294901760, %v3427_v62 }
 0x1be   :  { %2713 = vmatpush3.bf16.msra.mxu0 %v3373_v27  ;;  %v1340_v22 = vand.u32 4294901760, %v1339_v13  ;;  %v1347_v28 = vand.u32 4294901760, %v1346_v20  ;;  %v1352_v35 = vand.u32 4294901760, %v3410_v54  ;;  %v3643_v11 = vand.u32 4294901760, %v3429_v15 }
 0x1bf   :  { %2714 = vmatprep.subr.bf16.mxu0 %v2912_v0  ;;  %v2742_v13 = vpack.c.bf16 %v1389_v48, %v1382_v43  ;;  %v1395_v20 = vsub.f32 %v3427_v62, %v3644_v58  ;;  %v2760_v18 = vpack.c.bf16 %v3412_v59, %v3410_v54  ;;  %v1851_v43 = vld [vmem:[%s3633_s4] ss:$0 sm:$0xff]  ;;  %v2814_v34 = vpack.c.bf16 %v3654_v33, %v3653_v25 }
 0x1c0   :  { %v2733_v46 = vpack.c.bf16 %v1347_v28, %v1340_v22  ;;  %v1353_v55 = vsub.f32 %v3410_v54, %v1352_v35  ;;  %v1402_v22 = vsub.f32 %v3429_v15, %v3643_v11  ;;  %v3655_v52 = vand.u32 4294901760, %v3427_v62 }
 0x1c1   :  { %v1396_v28 = vand.u32 4294901760, %v1395_v20  ;;  %v3656_v54 = vand.u32 4294901760, %v3429_v15 }
 0x1c2   :  { %2716 = vmatpush3.bf16.msra.mxu0 %v3383_v47  ;;  %v1354_v6 = vand.u32 4294901760, %v1353_v55  ;;  %v1403_v55 = vand.u32 4294901760, %v1402_v22 }
 0x1c3   :  { %2717 = vmatprep.subr.bf16.mxu0 %v2912_v0  ;;  %v2817_v59 = vpack.c.bf16 %v3656_v54, %v3655_v52 }
 0x1c4   :  { %v2736_v57 = vpack.c.bf16 %v1361_v26, %v1354_v6  ;;  %v2745_v56 = vpack.c.bf16 %v1403_v55, %v1396_v28  ;;  %v2748_v6 = vpack.c.bf16 %v3234_v60, %v3232_v50  ;;  %v2751_v26 = vpack.c.bf16 %v3238_v41, %v3236_v61 }
 0x1c5   :  { %v2802_v50 = vpack.c.bf16 %v1331_v31, %v1324_v19  ;;  %v2805_v60 = vpack.c.bf16 %v1345_v10, %v1338_v9  ;;  %v2808_v61 = vpack.c.bf16 %v1359_v39, %v1352_v35  ;;  %v2811_v41 = vpack.c.bf16 %v1373_v24, %v1366_v23 }
 0x1c6   :  { %2719 = vmatpush3.bf16.msra.mxu0 %v3393_v30 }
 0x1c7   :  { %2720 = vmatprep.subr.bf16.mxu0 %v2912_v0 }
 0x1ca   :  { %2722 = vmatpush3.bf16.msra.mxu0 %v3425_v44 }
 0x1cb   :  { %2723 = vmatprep.subr.bf16.mxu0 %v2912_v0 }
 0x290   :  { %v1174_v48 = vpop.f32.mrb[2].mxu1 }
 0x291   :  { %v2845_v20 = vadd.f32 %v1851_v43, %v1174_v48  ;;  %v2326_v22 = vpop.f32.mrb[3].mxu1 }
 0x293   :  { %2883 = vtanh.f32 %v2845_v20 }
 0x29d   :  { %v2884_v28 = vpop.eup %2883 }
 0x29e   :  { %v3518_v55 = vand.u32 4294901760, %v2884_v28 }
 0x2a0   :  { %v1284_v11 = vsub.f32 %v2884_v28, %v3518_v55 }
 0x2a2   :  { %v1285_v58 = vand.u32 4294901760, %v1284_v11 }
 0x2a4   :  { %v1286_v3 = vsub.f32 %v1284_v11, %v1285_v58 }
 0x2a6   :  { %v1287_v2 = vand.u32 4294901760, %v1286_v3 }
 0x2a8   :  { %2360 = vmatmul.mubr.f32.vlgmr.msra.gmra.mrb[2].mxu0 %v1287_v2 }
 0x2a9   :  { %2725 = vmatpush3.bf16.msra.mxu0 %v3447_v16  ;;  %2394 = vmatprep.mubr.msk.f32.mxu0 %vm2913_vm0, %v2914_v1  ;;  %v2796_v16 = vpack.c.bf16 %v1303_v32, %v1296_v14 }
 0x2aa   :  { %2726 = vmatprep.subr.bf16.mxu0 %v2912_v0 }
 0x2ad   :  { %2728 = vmatpush3.bf16.msra.mxu0 %v3451_v36  ;;  %v2799_v36 = vpack.c.bf16 %v1317_v38, %v1310_v37 }
 0x2ae   :  { %2729 = vmatprep.subr.bf16.mxu0 %v2912_v0 }
 0x2b1   :  { %2731 = vmatpush3.bf16.msra.mxu0 %v2730_v21 }
 0x2b2   :  { %2732 = vmatprep.subr.bf16.mxu0 %v2912_v0 }
 0x2b5   :  { %2734 = vmatpush3.bf16.msra.mxu0 %v2733_v46 }
 0x2b6   :  { %2735 = vmatprep.subr.bf16.mxu0 %v2912_v0 }
 0x2b9   :  { %2737 = vmatpush3.bf16.msra.mxu0 %v2736_v57 }
 0x2ba   :  { %2738 = vmatprep.subr.bf16.mxu0 %v2912_v0 }
 0x2bd   :  { %2740 = vmatpush3.bf16.msra.mxu0 %v2739_v4 }
 0x2be   :  { %2741 = vmatprep.subr.bf16.mxu0 %v2912_v0 }
 0x2c1   :  { %2743 = vmatpush3.bf16.msra.mxu0 %v2742_v13 }
 0x2c2   :  { %2744 = vmatprep.subr.bf16.mxu0 %v2912_v0 }
 0x2c5   :  { %2746 = vmatpush3.bf16.msra.mxu0 %v2745_v56 }
 0x2c6   :  { %2747 = vmatprep.subr.bf16.mxu0 %v2912_v0 }
 0x2c8   :  { %2395 = vmatmul.mubr.f32.vlgmr.msra.gmra.mrb[2].mxu0 %v3518_v55 }
 0x2c9   :  { %2749 = vmatpush3.bf16.msra.mxu0 %v2748_v6  ;;  %2429 = vmatprep.mubr.msk.f32.mxu0 %vm2913_vm0, %v2914_v1 }
 0x2ca   :  { %2750 = vmatprep.subr.bf16.mxu0 %v2912_v0 }
 0x2cd   :  { %2752 = vmatpush3.bf16.msra.mxu0 %v2751_v26 }
 0x2ce   :  { %2753 = vmatprep.subr.bf16.mxu0 %v2912_v0 }
 0x2d1   :  { %2755 = vmatpush3.bf16.msra.mxu0 %v2754_v5 }
 0x2d2   :  { %2756 = vmatprep.subr.bf16.mxu0 %v2912_v0 }
 0x2d5   :  { %2758 = vmatpush3.bf16.msra.mxu0 %v2757_v17 }
 0x2d6   :  { %2759 = vmatprep.subr.bf16.mxu0 %v2912_v0 }
 0x2d9   :  { %2761 = vmatpush3.bf16.msra.mxu0 %v2760_v18 }
 0x2da   :  { %2762 = vmatprep.subr.bf16.mxu0 %v2912_v0 }
 0x2dd   :  { %2764 = vmatpush3.bf16.msra.mxu0 %v2763_v63 }
 0x2de   :  { %2765 = vmatprep.subr.bf16.mxu0 %v2912_v0 }
 0x2e1   :  { %2767 = vmatpush3.bf16.msra.mxu0 %v2766_v7 }
 0x2e2   :  { %2768 = vmatprep.subr.bf16.mxu0 %v2912_v0 }
 0x2e5   :  { %2770 = vmatpush3.bf16.msra.mxu0 %v2769_v8 }
 0x2e6   :  { %2771 = vmatprep.subr.bf16.mxu0 %v2912_v0 }
 0x2e8   :  { %2430 = vmatmul.mubr.f32.vlgmr.msra.gmra.mrb[2].mxu0 %v1284_v11 }
 0x2e9   :  { %2773 = vmatpush3.bf16.msra.mxu0 %v3230_v45  ;;  %2464 = vmatprep.mubr.msk.f32.mxu0 %vm2913_vm0, %v2914_v1 }
 0x2ea   :  { %2774 = vmatprep.subr.bf16.mxu0 %v2912_v0 }
 0x2ed   :  { %2776 = vmatpush3.bf16.msra.mxu0 %v3241_v51 }
 0x2ee   :  { %2777 = vmatprep.subr.bf16.mxu0 %v2912_v0 }
 0x2f1   :  { %2779 = vmatpush3.bf16.msra.mxu0 %v3353_v53 }
 0x2f2   :  { %2780 = vmatprep.subr.bf16.mxu0 %v2912_v0 }
 0x2f5   :  { %2782 = vmatpush3.bf16.msra.mxu0 %v3363_v12 }
 0x2f6   :  { %2783 = vmatprep.subr.bf16.mxu0 %v2912_v0 }
 0x2f9   :  { %2785 = vmatpush3.bf16.msra.mxu0 %v3373_v27 }
 0x2fa   :  { %2786 = vmatprep.subr.bf16.mxu0 %v2912_v0 }
 0x2fd   :  { %2788 = vmatpush3.bf16.msra.mxu0 %v3383_v47 }
 0x2fe   :  { %2789 = vmatprep.subr.bf16.mxu0 %v2912_v0 }
 0x301   :  { %2791 = vmatpush3.bf16.msra.mxu0 %v3393_v30 }
 0x302   :  { %2792 = vmatprep.subr.bf16.mxu0 %v2912_v0 }
 0x305   :  { %2794 = vmatpush3.bf16.msra.mxu0 %v3425_v44 }
 0x306   :  { %2795 = vmatprep.subr.bf16.mxu0 %v2912_v0 }
 0x308   :  { %2465 = vmatmul.mubr.f32.vlgmr.msra.gmra.mrb[2].mxu0 %v1285_v58 }
 0x309   :  { %2797 = vmatpush3.bf16.msra.mxu0 %v2796_v16  ;;  %2499 = vmatprep.mubr.msk.f32.mxu0 %vm2913_vm0, %v2914_v1 }
 0x30a   :  { %2798 = vmatprep.subr.bf16.mxu0 %v2912_v0 }
 0x30d   :  { %2800 = vmatpush3.bf16.msra.mxu0 %v2799_v36 }
 0x30e   :  { %2801 = vmatprep.subr.bf16.mxu0 %v2912_v0 }
 0x311   :  { %2803 = vmatpush3.bf16.msra.mxu0 %v2802_v50 }
 0x312   :  { %2804 = vmatprep.subr.bf16.mxu0 %v2912_v0 }
 0x315   :  { %2806 = vmatpush3.bf16.msra.mxu0 %v2805_v60 }
 0x316   :  { %2807 = vmatprep.subr.bf16.mxu0 %v2912_v0 }
 0x319   :  { %2809 = vmatpush3.bf16.msra.mxu0 %v2808_v61 }
 0x31a   :  { %2810 = vmatprep.subr.bf16.mxu0 %v2912_v0 }
 0x31d   :  { %2812 = vmatpush3.bf16.msra.mxu0 %v2811_v41 }
 0x31e   :  { %2813 = vmatprep.subr.bf16.mxu0 %v2912_v0 }
 0x321   :  { %2815 = vmatpush3.bf16.msra.mxu0 %v2814_v34 }
 0x322   :  { %2816 = vmatprep.subr.bf16.mxu0 %v2912_v0 }
 0x325   :  { %2818 = vmatpush3.bf16.msra.mxu0 %v2817_v59 }
 0x326   :  { %2819 = vmatprep.subr.bf16.mxu0 %v2912_v0 }
 0x328   :  { %2500 = vmatmul.mubr.f32.vlgmr.msra.gmra.mrb[2].mxu0 %v3518_v55 }
 0x329   :  { %2821 = vmatpush3.bf16.msra.mxu0 %v3230_v45  ;;  %2534 = vmatprep.mubr.msk.f32.mxu0 %vm2913_vm0, %v2914_v1  ;;  %v1852_v1 = vld [vmem:[%s3635_s6] ss:$0 sm:$0xff] }
 0x32a   :  { %2822 = vmatprep.subr.bf16.mxu0 %v2912_v0 }
 0x32d   :  { %2824 = vmatpush3.bf16.msra.mxu0 %v3241_v51 }
 0x32e   :  { %2825 = vmatprep.subr.bf16.mxu0 %v2912_v0 }
 0x331   :  { %2827 = vmatpush3.bf16.msra.mxu0 %v3353_v53 }
 0x332   :  { %2828 = vmatprep.subr.bf16.mxu0 %v2912_v0 }
 0x335   :  { %2830 = vmatpush3.bf16.msra.mxu0 %v3363_v12 }
 0x336   :  { %2831 = vmatprep.subr.bf16.mxu0 %v2912_v0 }
 0x339   :  { %2833 = vmatpush3.bf16.msra.mxu0 %v3373_v27 }
 0x33a   :  { %2834 = vmatprep.subr.bf16.mxu0 %v2912_v0 }
 0x33d   :  { %2836 = vmatpush3.bf16.msra.mxu0 %v3383_v47 }
 0x33e   :  { %2837 = vmatprep.subr.bf16.mxu0 %v2912_v0 }
 0x341   :  { %2839 = vmatpush3.bf16.msra.mxu0 %v3393_v30 }
 0x342   :  { %2840 = vmatprep.subr.bf16.mxu0 %v2912_v0 }
 0x345   :  { %2842 = vmatpush3.bf16.msra.mxu0 %v3425_v44 }
 0x348   :  { %2535 = vmatmul.mubr.f32.vlgmr.msra.gmra.mrb[2].mxu0 %v3518_v55 }
 0x41b   :  { %v1839_v45 = vpop.f32.mrb[2].mxu0 }
 0x41c   :  { %v2846_v51 = vadd.f32 %v1852_v1, %v1839_v45  ;;  %v2536_v53 = vpop.f32.mrb[3].mxu0 }
 0x41e   :  { %1844 = vst.msk [vmem:[%s3636_s7] sm:$0xff] %vm1843_vm2, %v2846_v51 }
 0x41f   :  { %1849 = vsyncpa [#allocation3], 1 }

</bundles_post_ra>
